<compile_context>
chip_gen: v7x
topology: tpu7x:2x2x1
jax: 0.10.0
libtpu: 0.0.40
codegen_flags: <defaults>
</compile_context>

<pallas_src>
import jax
import jax.numpy as jnp
from jax import lax
from jax.experimental import pallas as pl
from jax.experimental.pallas import tpu as pltpu

INPUT_SIZE = 1
HIDDEN = 32


def rnn_kernel(x_ref, h0_ref, whh_t_ref, pvec_ref, outs_ref, hlast_ref, slab_ref):
    """Fused batch-first RNN forward; the whole (tiny) sequence lives in VMEM.

    x_ref:     (batch, seq, 1)        batch-first input (INPUT_SIZE == 1)
    h0_ref:    (batch, HIDDEN)        initial hidden state
    whh_t_ref: (HIDDEN, HIDDEN)       W_hh^T
    pvec_ref:  (4, HIDDEN)            row0 = W_ih^T row, row1 = b_ih + b_hh,
                                      row2 = W_out row,  row3 = b_out (broadcast)
    outs_ref:  (batch, seq)           fused output projection (nn.Linear(32, 1))
    hlast_ref: (batch, HIDDEN)        final hidden state
    slab_ref:  (batch, seq, HIDDEN)   scratch: input proj, overwritten by h_t
    """
    seq = x_ref.shape[1]

    # Hoist the recurrent weight out of the time loop (read once into vregs).
    whh = whh_t_ref[...]                               # (H, H)
    w_in = pvec_ref[0:1, :]                            # (1, H)
    bias = pvec_ref[1:2, :]                            # (1, H)

    # Input projection + folded bias for ALL timesteps, off the serial chain.
    # INPUT_SIZE == 1 => x @ W_ih^T is a lane-broadcast multiply (VPU, no MXU).
    slab_ref[...] = x_ref[...] * w_in[None, :, :] + bias[None, :, :]

    # Serial recurrence: h_t = tanh(xb_t + h_{t-1} @ W_hh^T).
    # seq is small and static -> a Python loop keeps every slab slice static.
    h = h0_ref[...]                                    # (batch, H)
    for t in range(seq):
        pre = slab_ref[:, t, :] + jnp.dot(
            h, whh,
            preferred_element_type=jnp.float32,
            precision=lax.Precision.HIGHEST)
        h = jnp.tanh(pre)
        slab_ref[:, t, :] = h                          # overwrite in place
    hlast_ref[...] = h

    # Fused output projection: outs[b, t] = sum_h r_out[b, t, h] * w_out[h] + b_out
    # One post-loop lane reduce (XLU) -> single small write, no per-step column stores.
    w_out = pvec_ref[2:3, :]                           # (1, H)
    b_out = pvec_ref[3:4, 0:1]                         # (1, 1)
    outs_ref[...] = jnp.sum(slab_ref[...] * w_out[None, :, :], axis=-1) + b_out


def prepare_params(params):
    """Per-call-invariant parameter prep, hoisted out of the forward pass."""
    pvec = jnp.concatenate(
        [
            params["w_ih"].T.reshape(1, HIDDEN),                          # W_ih^T row
            (params["b_ih"] + params["b_hh"]).reshape(1, HIDDEN),         # folded bias
            params["w_out"].reshape(1, HIDDEN),                           # out.weight
            jnp.broadcast_to(params["b_out"].reshape(1, 1), (1, HIDDEN)), # out.bias
        ],
        axis=0,
    ).astype(jnp.float32)                                                 # (4, H)
    return {
        "whh_t": params["w_hh"].T.astype(jnp.float32),                    # (H, H)
        "pvec": pvec,
    }


@jax.jit
def _rnn_forward_jit(x, h0, whh_t, pvec):
    batch, seq, in_sz = x.shape
    assert in_sz == INPUT_SIZE == 1  # kernel specializes the K=1 input projection

    outs2d, h_last = pl.pallas_call(
        rnn_kernel,
        out_shape=(
            jax.ShapeDtypeStruct((batch, seq), jnp.float32),
            jax.ShapeDtypeStruct((batch, HIDDEN), jnp.float32),
        ),
        grid_spec=pltpu.PrefetchScalarGridSpec(
            num_scalar_prefetch=0,
            grid=(1,),  # single grid step; recurrence runs inside the kernel body
            in_specs=[
                pl.BlockSpec((batch, seq, INPUT_SIZE), lambda i: (0, 0, 0)),  # x
                pl.BlockSpec((batch, HIDDEN), lambda i: (0, 0)),              # h0
                pl.BlockSpec((HIDDEN, HIDDEN), lambda i: (0, 0)),             # W_hh^T
                pl.BlockSpec((4, HIDDEN), lambda i: (0, 0)),                  # packed params
            ],
            out_specs=[
                pl.BlockSpec((batch, seq), lambda i: (0, 0)),                 # outs
                pl.BlockSpec((batch, HIDDEN), lambda i: (0, 0)),              # h_last
            ],
            scratch_shapes=[pltpu.VMEM((batch, seq, HIDDEN), jnp.float32)],   # r_out slab
        ),
        compiler_params=pltpu.CompilerParams(
            dimension_semantics=("arbitrary",)),
    )(x, h0, whh_t, pvec)

    # r_out.view(-1, 32) @ W_out^T + b_out, already computed in-kernel as (batch, seq):
    # row-major reshape gives exactly the PyTorch (batch*seq, 1) ordering.
    outs = outs2d.reshape(-1, 1)
    return outs, h_last[None, :, :]                    # (1, batch, HIDDEN)


def rnn_forward(x, h_state, prep):
    """x: (batch, seq, INPUT_SIZE) batch-first; h_state: (1, batch, HIDDEN) or None."""
    batch = x.shape[0]
    if h_state is None:
        h0 = jnp.zeros((batch, HIDDEN), jnp.float32)
    else:
        h0 = h_state[0].astype(jnp.float32)
    return _rnn_forward_jit(x.astype(jnp.float32), h0, prep["whh_t"], prep["pvec"])


def init_params(key):
    # Matches nn.RNN / nn.Linear shapes; uniform(-1/sqrt(hidden), 1/sqrt(hidden)) init.
    k = jax.random.split(key, 6)
    bound = 1.0 / jnp.sqrt(jnp.float32(HIDDEN))
    u = lambda kk, shp: jax.random.uniform(kk, shp, jnp.float32, -bound, bound)
    return {
        "w_ih": u(k[0], (HIDDEN, INPUT_SIZE)),   # weight_ih_l0
        "w_hh": u(k[1], (HIDDEN, HIDDEN)),       # weight_hh_l0
        "b_ih": u(k[2], (HIDDEN,)),              # bias_ih_l0
        "b_hh": u(k[3], (HIDDEN,)),              # bias_hh_l0
        "w_out": u(k[4], (1, HIDDEN)),           # out.weight
        "b_out": u(k[5], (1,)),                  # out.bias
    }


def rnn_reference(x, h_state, params):
    batch, seq, _ = x.shape
    h = jnp.zeros((batch, HIDDEN), jnp.float32) if h_state is None else h_state[0]
    b = params["b_ih"] + params["b_hh"]
    hp = lax.Precision.HIGHEST
    outs = []
    for t in range(seq):
        # K=1 input projection written as a broadcast multiply (exact f32).
        h = jnp.tanh(x[:, t, :] * params["w_ih"].T
                     + jnp.dot(h, params["w_hh"].T, precision=hp) + b)
        outs.append(h)
    r_out = jnp.stack(outs, axis=1)                               # (batch, seq, hidden)
    o = jnp.dot(r_out.reshape(-1, HIDDEN), params["w_out"].T, precision=hp) \
        + params["b_out"]
    return o, h[None]


if __name__ == "__main__":
    key = jax.random.PRNGKey(0)
    kp, kx = jax.random.split(key)
    params = init_params(kp)
    prep = prepare_params(params)

    batch, seq = 2, 8
    x = jax.random.normal(kx, (batch, seq, INPUT_SIZE), jnp.float32)

    # First call: h_state = None (zeros), like the PyTorch script's first step.
    outs, h_state = rnn_forward(x, None, prep)
    outs, h_state = jax.block_until_ready((outs, h_state))

    outs_ref, h_ref = rnn_reference(x, None, params)
    assert outs.shape == (batch * seq, 1)
    assert h_state.shape == (1, batch, HIDDEN)
    assert jnp.allclose(outs, outs_ref, atol=1e-4, rtol=1e-4)
    assert jnp.allclose(h_state, h_ref, atol=1e-4, rtol=1e-4)

    # Second call: feed the carried hidden state back in (as the training loop does).
    x2 = jax.random.normal(jax.random.PRNGKey(1), (batch, seq, INPUT_SIZE), jnp.float32)
    outs2, h_state2 = rnn_forward(x2, h_state, prep)
    outs2, h_state2 = jax.block_until_ready((outs2, h_state2))
    outs2_ref, h2_ref = rnn_reference(x2, h_state, params)
    assert jnp.allclose(outs2, outs2_ref, atol=1e-4, rtol=1e-4)
    assert jnp.allclose(h_state2, h2_ref, atol=1e-4, rtol=1e-4)

    print("KERNEL_OK")
</pallas_src>

<mosaic_0001>
module attributes {stable_mosaic.version = 11 : i64} {
  func.func @rnn_kernel(%arg0: i32, %arg1: memref<2x8x1xf32, #tpu.memory_space<vmem>>, %arg2: memref<2x32xf32, #tpu.memory_space<vmem>>, %arg3: memref<32x32xf32, #tpu.memory_space<vmem>>, %arg4: memref<4x32xf32, #tpu.memory_space<vmem>>, %arg5: memref<2x8xf32, #tpu.memory_space<vmem>>, %arg6: memref<2x32xf32, #tpu.memory_space<vmem>>, %arg7: memref<2x8x32xf32, #tpu.memory_space<vmem>>) attributes {dimension_semantics = [#tpu.dimension_semantics<arbitrary>], iteration_bounds = array<i64: 1>, scalar_prefetch = 0 : i64, scratch_operands = 1 : i64, tpu.core_type = #tpu.core_type<tc>, window_params = [{pipeline_mode = #tpu.pipeline_mode<synchronous>, transform_indices = @transform_0, window_bounds = array<i64: 2, 8, 1>}, {pipeline_mode = #tpu.pipeline_mode<synchronous>, transform_indices = @transform_1, window_bounds = array<i64: 2, 32>}, {pipeline_mode = #tpu.pipeline_mode<synchronous>, transform_indices = @transform_2, window_bounds = array<i64: 32, 32>}, {pipeline_mode = #tpu.pipeline_mode<synchronous>, transform_indices = @transform_3, window_bounds = array<i64: 4, 32>}, {pipeline_mode = #tpu.pipeline_mode<synchronous>, transform_indices = @transform_4, window_bounds = array<i64: 2, 8>}, {pipeline_mode = #tpu.pipeline_mode<synchronous>, transform_indices = @transform_5, window_bounds = array<i64: 2, 32>}]} {
    %c0 = arith.constant 0 : index
    %c0_0 = arith.constant 0 : index
    %0 = vector.load %arg3[%c0, %c0_0] : memref<32x32xf32, #tpu.memory_space<vmem>>, vector<32x32xf32>
    %c0_1 = arith.constant 0 : index
    %c0_2 = arith.constant 0 : index
    %1 = vector.load %arg4[%c0_1, %c0_2] : memref<4x32xf32, #tpu.memory_space<vmem>>, vector<1x32xf32>
    %c1 = arith.constant 1 : index
    %c0_3 = arith.constant 0 : index
    %2 = vector.load %arg4[%c1, %c0_3] : memref<4x32xf32, #tpu.memory_space<vmem>>, vector<1x32xf32>
    %c0_4 = arith.constant 0 : index
    %c0_5 = arith.constant 0 : index
    %c0_6 = arith.constant 0 : index
    %3 = vector.load %arg1[%c0_4, %c0_5, %c0_6] : memref<2x8x1xf32, #tpu.memory_space<vmem>>, vector<2x8x1xf32>
    %4 = vector.shape_cast %1 : vector<1x32xf32> to vector<1x1x32xf32>
    %5 = vector.broadcast %3 : vector<2x8x1xf32> to vector<2x8x32xf32>
    %6 = vector.broadcast %4 : vector<1x1x32xf32> to vector<2x8x32xf32>
    %7 = arith.mulf %5, %6 : vector<2x8x32xf32>
    %8 = vector.shape_cast %2 : vector<1x32xf32> to vector<1x1x32xf32>
    %9 = vector.broadcast %8 : vector<1x1x32xf32> to vector<2x8x32xf32>
    %10 = arith.addf %7, %9 : vector<2x8x32xf32>
    %c0_7 = arith.constant 0 : index
    %c0_8 = arith.constant 0 : index
    %c0_9 = arith.constant 0 : index
    %11 = vector.load %arg7[%c0_7, %c0_8, %c0_9] : memref<2x8x32xf32, #tpu.memory_space<vmem>>, vector<2x8x32xf32>
    tpu.vector_store %arg7[%c0_7, %c0_8, %c0_9], %10 {strides = array<i32>} : memref<2x8x32xf32, #tpu.memory_space<vmem>>, vector<2x8x32xf32>,
    %c0_10 = arith.constant 0 : index
    %c0_11 = arith.constant 0 : index
    %12 = vector.load %arg2[%c0_10, %c0_11] : memref<2x32xf32, #tpu.memory_space<vmem>>, vector<2x32xf32>
    %c0_12 = arith.constant 0 : index
    %c0_13 = arith.constant 0 : index
    %c0_14 = arith.constant 0 : index
    %13 = vector.load %arg7[%c0_12, %c0_13, %c0_14] : memref<2x8x32xf32, #tpu.memory_space<vmem>>, vector<2x1x32xf32>
    %14 = vector.shape_cast %13 : vector<2x1x32xf32> to vector<2x32xf32>
    %cst = arith.constant dense<0.000000e+00> : vector<2x32xf32>
    %15 = tpu.matmul %12, %0, %cst {dimension_numbers = #tpu.dot_dimension_numbers<[1], [0], [0], [1], [0, 0, 1, 1], [], []>, precision = #tpu.contract_precision<fp32>} : vector<2x32xf32>, vector<32x32xf32>, vector<2x32xf32> -> vector<2x32xf32>
    %16 = arith.addf %14, %15 : vector<2x32xf32>
    %17 = math.tanh %16 : vector<2x32xf32>
    %c0_15 = arith.constant 0 : index
    %c0_16 = arith.constant 0 : index
    %c0_17 = arith.constant 0 : index
    %18 = vector.load %arg7[%c0_15, %c0_16, %c0_17] : memref<2x8x32xf32, #tpu.memory_space<vmem>>, vector<2x1x32xf32>
    %19 = vector.shape_cast %18 : vector<2x1x32xf32> to vector<2x32xf32>
    %20 = vector.shape_cast %17 : vector<2x32xf32> to vector<2x1x32xf32>
    tpu.vector_store %arg7[%c0_15, %c0_16, %c0_17], %20 {strides = array<i32>} : memref<2x8x32xf32, #tpu.memory_space<vmem>>, vector<2x1x32xf32>,
    %c0_18 = arith.constant 0 : index
    %c1_19 = arith.constant 1 : index
    %c0_20 = arith.constant 0 : index
    %21 = vector.load %arg7[%c0_18, %c1_19, %c0_20] : memref<2x8x32xf32, #tpu.memory_space<vmem>>, vector<2x1x32xf32>
    %22 = vector.shape_cast %21 : vector<2x1x32xf32> to vector<2x32xf32>
    %cst_21 = arith.constant dense<0.000000e+00> : vector<2x32xf32>
    %23 = tpu.matmul %17, %0, %cst_21 {dimension_numbers = #tpu.dot_dimension_numbers<[1], [0], [0], [1], [0, 0, 1, 1], [], []>, precision = #tpu.contract_precision<fp32>} : vector<2x32xf32>, vector<32x32xf32>, vector<2x32xf32> -> vector<2x32xf32>
    %24 = arith.addf %22, %23 : vector<2x32xf32>
    %25 = math.tanh %24 : vector<2x32xf32>
    %c0_22 = arith.constant 0 : index
    %c1_23 = arith.constant 1 : index
    %c0_24 = arith.constant 0 : index
    %26 = vector.load %arg7[%c0_22, %c1_23, %c0_24] : memref<2x8x32xf32, #tpu.memory_space<vmem>>, vector<2x1x32xf32>
    %27 = vector.shape_cast %26 : vector<2x1x32xf32> to vector<2x32xf32>
    %28 = vector.shape_cast %25 : vector<2x32xf32> to vector<2x1x32xf32>
    tpu.vector_store %arg7[%c0_22, %c1_23, %c0_24], %28 {strides = array<i32>} : memref<2x8x32xf32, #tpu.memory_space<vmem>>, vector<2x1x32xf32>,
    %c0_25 = arith.constant 0 : index
    %c2 = arith.constant 2 : index
    %c0_26 = arith.constant 0 : index
    %29 = vector.load %arg7[%c0_25, %c2, %c0_26] : memref<2x8x32xf32, #tpu.memory_space<vmem>>, vector<2x1x32xf32>
    %30 = vector.shape_cast %29 : vector<2x1x32xf32> to vector<2x32xf32>
    %cst_27 = arith.constant dense<0.000000e+00> : vector<2x32xf32>
    %31 = tpu.matmul %25, %0, %cst_27 {dimension_numbers = #tpu.dot_dimension_numbers<[1], [0], [0], [1], [0, 0, 1, 1], [], []>, precision = #tpu.contract_precision<fp32>} : vector<2x32xf32>, vector<32x32xf32>, vector<2x32xf32> -> vector<2x32xf32>
    %32 = arith.addf %30, %31 : vector<2x32xf32>
    %33 = math.tanh %32 : vector<2x32xf32>
    %c0_28 = arith.constant 0 : index
    %c2_29 = arith.constant 2 : index
    %c0_30 = arith.constant 0 : index
    %34 = vector.load %arg7[%c0_28, %c2_29, %c0_30] : memref<2x8x32xf32, #tpu.memory_space<vmem>>, vector<2x1x32xf32>
    %35 = vector.shape_cast %34 : vector<2x1x32xf32> to vector<2x32xf32>
    %36 = vector.shape_cast %33 : vector<2x32xf32> to vector<2x1x32xf32>
    tpu.vector_store %arg7[%c0_28, %c2_29, %c0_30], %36 {strides = array<i32>} : memref<2x8x32xf32, #tpu.memory_space<vmem>>, vector<2x1x32xf32>,
    %c0_31 = arith.constant 0 : index
    %c3 = arith.constant 3 : index
    %c0_32 = arith.constant 0 : index
    %37 = vector.load %arg7[%c0_31, %c3, %c0_32] : memref<2x8x32xf32, #tpu.memory_space<vmem>>, vector<2x1x32xf32>
    %38 = vector.shape_cast %37 : vector<2x1x32xf32> to vector<2x32xf32>
    %cst_33 = arith.constant dense<0.000000e+00> : vector<2x32xf32>
    %39 = tpu.matmul %33, %0, %cst_33 {dimension_numbers = #tpu.dot_dimension_numbers<[1], [0], [0], [1], [0, 0, 1, 1], [], []>, precision = #tpu.contract_precision<fp32>} : vector<2x32xf32>, vector<32x32xf32>, vector<2x32xf32> -> vector<2x32xf32>
    %40 = arith.addf %38, %39 : vector<2x32xf32>
    %41 = math.tanh %40 : vector<2x32xf32>
    %c0_34 = arith.constant 0 : index
    %c3_35 = arith.constant 3 : index
    %c0_36 = arith.constant 0 : index
    %42 = vector.load %arg7[%c0_34, %c3_35, %c0_36] : memref<2x8x32xf32, #tpu.memory_space<vmem>>, vector<2x1x32xf32>
    %43 = vector.shape_cast %42 : vector<2x1x32xf32> to vector<2x32xf32>
    %44 = vector.shape_cast %41 : vector<2x32xf32> to vector<2x1x32xf32>
    tpu.vector_store %arg7[%c0_34, %c3_35, %c0_36], %44 {strides = array<i32>} : memref<2x8x32xf32, #tpu.memory_space<vmem>>, vector<2x1x32xf32>,
    %c0_37 = arith.constant 0 : index
    %c4 = arith.constant 4 : index
    %c0_38 = arith.constant 0 : index
    %45 = vector.load %arg7[%c0_37, %c4, %c0_38] : memref<2x8x32xf32, #tpu.memory_space<vmem>>, vector<2x1x32xf32>
    %46 = vector.shape_cast %45 : vector<2x1x32xf32> to vector<2x32xf32>
    %cst_39 = arith.constant dense<0.000000e+00> : vector<2x32xf32>
    %47 = tpu.matmul %41, %0, %cst_39 {dimension_numbers = #tpu.dot_dimension_numbers<[1], [0], [0], [1], [0, 0, 1, 1], [], []>, precision = #tpu.contract_precision<fp32>} : vector<2x32xf32>, vector<32x32xf32>, vector<2x32xf32> -> vector<2x32xf32>
    %48 = arith.addf %46, %47 : vector<2x32xf32>
    %49 = math.tanh %48 : vector<2x32xf32>
    %c0_40 = arith.constant 0 : index
    %c4_41 = arith.constant 4 : index
    %c0_42 = arith.constant 0 : index
    %50 = vector.load %arg7[%c0_40, %c4_41, %c0_42] : memref<2x8x32xf32, #tpu.memory_space<vmem>>, vector<2x1x32xf32>
    %51 = vector.shape_cast %50 : vector<2x1x32xf32> to vector<2x32xf32>
    %52 = vector.shape_cast %49 : vector<2x32xf32> to vector<2x1x32xf32>
    tpu.vector_store %arg7[%c0_40, %c4_41, %c0_42], %52 {strides = array<i32>} : memref<2x8x32xf32, #tpu.memory_space<vmem>>, vector<2x1x32xf32>,
    %c0_43 = arith.constant 0 : index
    %c5 = arith.constant 5 : index
    %c0_44 = arith.constant 0 : index
    %53 = vector.load %arg7[%c0_43, %c5, %c0_44] : memref<2x8x32xf32, #tpu.memory_space<vmem>>, vector<2x1x32xf32>
    %54 = vector.shape_cast %53 : vector<2x1x32xf32> to vector<2x32xf32>
    %cst_45 = arith.constant dense<0.000000e+00> : vector<2x32xf32>
    %55 = tpu.matmul %49, %0, %cst_45 {dimension_numbers = #tpu.dot_dimension_numbers<[1], [0], [0], [1], [0, 0, 1, 1], [], []>, precision = #tpu.contract_precision<fp32>} : vector<2x32xf32>, vector<32x32xf32>, vector<2x32xf32> -> vector<2x32xf32>
    %56 = arith.addf %54, %55 : vector<2x32xf32>
    %57 = math.tanh %56 : vector<2x32xf32>
    %c0_46 = arith.constant 0 : index
    %c5_47 = arith.constant 5 : index
    %c0_48 = arith.constant 0 : index
    %58 = vector.load %arg7[%c0_46, %c5_47, %c0_48] : memref<2x8x32xf32, #tpu.memory_space<vmem>>, vector<2x1x32xf32>
    %59 = vector.shape_cast %58 : vector<2x1x32xf32> to vector<2x32xf32>
    %60 = vector.shape_cast %57 : vector<2x32xf32> to vector<2x1x32xf32>
    tpu.vector_store %arg7[%c0_46, %c5_47, %c0_48], %60 {strides = array<i32>} : memref<2x8x32xf32, #tpu.memory_space<vmem>>, vector<2x1x32xf32>,
    %c0_49 = arith.constant 0 : index
    %c6 = arith.constant 6 : index
    %c0_50 = arith.constant 0 : index
    %61 = vector.load %arg7[%c0_49, %c6, %c0_50] : memref<2x8x32xf32, #tpu.memory_space<vmem>>, vector<2x1x32xf32>
    %62 = vector.shape_cast %61 : vector<2x1x32xf32> to vector<2x32xf32>
    %cst_51 = arith.constant dense<0.000000e+00> : vector<2x32xf32>
    %63 = tpu.matmul %57, %0, %cst_51 {dimension_numbers = #tpu.dot_dimension_numbers<[1], [0], [0], [1], [0, 0, 1, 1], [], []>, precision = #tpu.contract_precision<fp32>} : vector<2x32xf32>, vector<32x32xf32>, vector<2x32xf32> -> vector<2x32xf32>
    %64 = arith.addf %62, %63 : vector<2x32xf32>
    %65 = math.tanh %64 : vector<2x32xf32>
    %c0_52 = arith.constant 0 : index
    %c6_53 = arith.constant 6 : index
    %c0_54 = arith.constant 0 : index
    %66 = vector.load %arg7[%c0_52, %c6_53, %c0_54] : memref<2x8x32xf32, #tpu.memory_space<vmem>>, vector<2x1x32xf32>
    %67 = vector.shape_cast %66 : vector<2x1x32xf32> to vector<2x32xf32>
    %68 = vector.shape_cast %65 : vector<2x32xf32> to vector<2x1x32xf32>
    tpu.vector_store %arg7[%c0_52, %c6_53, %c0_54], %68 {strides = array<i32>} : memref<2x8x32xf32, #tpu.memory_space<vmem>>, vector<2x1x32xf32>,
    %c0_55 = arith.constant 0 : index
    %c7 = arith.constant 7 : index
    %c0_56 = arith.constant 0 : index
    %69 = vector.load %arg7[%c0_55, %c7, %c0_56] : memref<2x8x32xf32, #tpu.memory_space<vmem>>, vector<2x1x32xf32>
    %70 = vector.shape_cast %69 : vector<2x1x32xf32> to vector<2x32xf32>
    %cst_57 = arith.constant dense<0.000000e+00> : vector<2x32xf32>
    %71 = tpu.matmul %65, %0, %cst_57 {dimension_numbers = #tpu.dot_dimension_numbers<[1], [0], [0], [1], [0, 0, 1, 1], [], []>, precision = #tpu.contract_precision<fp32>} : vector<2x32xf32>, vector<32x32xf32>, vector<2x32xf32> -> vector<2x32xf32>
    %72 = arith.addf %70, %71 : vector<2x32xf32>
    %73 = math.tanh %72 : vector<2x32xf32>
    %c0_58 = arith.constant 0 : index
    %c7_59 = arith.constant 7 : index
    %c0_60 = arith.constant 0 : index
    %74 = vector.load %arg7[%c0_58, %c7_59, %c0_60] : memref<2x8x32xf32, #tpu.memory_space<vmem>>, vector<2x1x32xf32>
    %75 = vector.shape_cast %74 : vector<2x1x32xf32> to vector<2x32xf32>
    %76 = vector.shape_cast %73 : vector<2x32xf32> to vector<2x1x32xf32>
    tpu.vector_store %arg7[%c0_58, %c7_59, %c0_60], %76 {strides = array<i32>} : memref<2x8x32xf32, #tpu.memory_space<vmem>>, vector<2x1x32xf32>,
    %c0_61 = arith.constant 0 : index
    %c0_62 = arith.constant 0 : index
    %77 = vector.load %arg6[%c0_61, %c0_62] : memref<2x32xf32, #tpu.memory_space<vmem>>, vector<2x32xf32>
    tpu.vector_store %arg6[%c0_61, %c0_62], %73 {strides = array<i32>} : memref<2x32xf32, #tpu.memory_space<vmem>>, vector<2x32xf32>,
    %c2_63 = arith.constant 2 : index
    %c0_64 = arith.constant 0 : index
    %78 = vector.load %arg4[%c2_63, %c0_64] : memref<4x32xf32, #tpu.memory_space<vmem>>, vector<1x32xf32>
    %c3_65 = arith.constant 3 : index
    %c0_66 = arith.constant 0 : index
    %79 = vector.load %arg4[%c3_65, %c0_66] : memref<4x32xf32, #tpu.memory_space<vmem>>, vector<1x1xf32>
    %c0_67 = arith.constant 0 : index
    %c0_68 = arith.constant 0 : index
    %c0_69 = arith.constant 0 : index
    %80 = vector.load %arg7[%c0_67, %c0_68, %c0_69] : memref<2x8x32xf32, #tpu.memory_space<vmem>>, vector<2x8x32xf32>
    %81 = vector.shape_cast %78 : vector<1x32xf32> to vector<1x1x32xf32>
    %82 = vector.broadcast %81 : vector<1x1x32xf32> to vector<2x8x32xf32>
    %83 = arith.mulf %80, %82 : vector<2x8x32xf32>
    %cst_70 = arith.constant dense<0.000000e+00> : vector<2x8xf32>
    %84 = vector.multi_reduction <add>, %83, %cst_70 [2] : vector<2x8x32xf32> to vector<2x8xf32>
    %85 = vector.broadcast %79 : vector<1x1xf32> to vector<2x8xf32>
    %86 = arith.addf %84, %85 : vector<2x8xf32>
    %c0_71 = arith.constant 0 : index
    %c0_72 = arith.constant 0 : index
    %87 = vector.load %arg5[%c0_71, %c0_72] : memref<2x8xf32, #tpu.memory_space<vmem>>, vector<2x8xf32>
    tpu.vector_store %arg5[%c0_71, %c0_72], %86 {strides = array<i32>} : memref<2x8xf32, #tpu.memory_space<vmem>>, vector<2x8xf32>,
    return
  }
  func.func @transform_0(%arg0: i32) -> (i32, i32, i32) {
    %c0_i32 = arith.constant 0 : i32
    %c0_i32_0 = arith.constant 0 : i32
    %c0_i32_1 = arith.constant 0 : i32
    %c0_i32_2 = arith.constant 0 : i32
    return %c0_i32, %c0_i32_0, %c0_i32_1 : i32, i32, i32
  }
  func.func @transform_1(%arg0: i32) -> (i32, i32) {
    %c0_i32 = arith.constant 0 : i32
    %c0_i32_0 = arith.constant 0 : i32
    %c0_i32_1 = arith.constant 0 : i32
    return %c0_i32, %c0_i32_0 : i32, i32
  }
  func.func @transform_2(%arg0: i32) -> (i32, i32) {
    %c0_i32 = arith.constant 0 : i32
    %c0_i32_0 = arith.constant 0 : i32
    %c0_i32_1 = arith.constant 0 : i32
    return %c0_i32, %c0_i32_0 : i32, i32
  }
  func.func @transform_3(%arg0: i32) -> (i32, i32) {
    %c0_i32 = arith.constant 0 : i32
    %c0_i32_0 = arith.constant 0 : i32
    %c0_i32_1 = arith.constant 0 : i32
    return %c0_i32, %c0_i32_0 : i32, i32
  }
  func.func @transform_4(%arg0: i32) -> (i32, i32) {
    %c0_i32 = arith.constant 0 : i32
    %c0_i32_0 = arith.constant 0 : i32
    %c0_i32_1 = arith.constant 0 : i32
    return %c0_i32, %c0_i32_0 : i32, i32
  }
  func.func @transform_5(%arg0: i32) -> (i32, i32) {
    %c0_i32 = arith.constant 0 : i32
    %c0_i32_0 = arith.constant 0 : i32
    %c0_i32_1 = arith.constant 0 : i32
    return %c0_i32, %c0_i32_0 : i32, i32
  }
}

</mosaic_0001>

<bundles_post_ra>
// kernel: _rnn_forward_jit.1
= control target key start
LH: loop header
LB: loop body
LE: loop exit
PB: predicated region body
PF: predicated region fallthrough
CT: control target
= control target key end

     0   :  { %11 = vsyncpa [#allocation4], 0  ;;  %s5818_s0 = inlined_call_operand.vmem [shape: f32[2,8,1], index: 0, kind: input, shape index: {}]   ;;  %s5819_s1 = inlined_call_operand.vmem [shape: f32[2,32], index: 1, kind: input, shape index: {}]   ;;  %s5820_s2 = inlined_call_operand.hbm [shape: f32[32,32], index: 2, kind: input, shape index: {}]   ;;  %s5821_s3 = inlined_call_operand.vmem [shape: f32[4,32], index: 3, kind: input, shape index: {}]   ;;  %s5822_s4 = inlined_call_operand.vmem [shape: f32[2,8], index: 4, kind: output, shape index: {0}]   ;;  %s5823_s5 = inlined_call_operand.hbm [shape: f32[2,32], index: 5, kind: output, shape index: {1}]  }
   0x1   :  { %12 = vsyncpa [#allocation5], 0  ;;  %s5385_s18 = smov [#allocation3]   ;;  %s5337_s22 = scalar_lea.hbm %s5820_s2, 512 }
   0x2   :  { %s22_s19 = sshll.u32 %s5385_s18, 4  ;;  %p5338_p0 = scmp.ne.s32.totalorder %s5820_s2, %s5337_s22  ;;  %s23_s19 = int_to_ptr.vmem [resolvable:$true] %s22_s19 }
   0x3   :  { %p5341_p1 = scmp.lt.u32.totalorder %s5337_s22, %s5820_s2 }
   0x5   :  { %p5343_p2 = pnand %p5341_p1, %p5338_p0 }
   0x7   :  { %5346 = shalt.err (!%p5343_p2)
}
   0x8   :  { %s5347_s27 = scalar_lea.vmem %s23_s19, 512  ;;  %p5352_p4 = scmp.lt.s32.totalorder %s23_s19, %s23_s19 }
   0x9   :  { %p5348_p3 = scmp.ne.s32.totalorder %s23_s19, %s5347_s27  ;;  %p5353_p5 = scmp.lt.s32.totalorder %s5347_s27, %s5347_s27 }
   0xb   :  { %p5354_p6 = por %p5353_p5, %p5352_p4 }
   0xd   :  { %p5355_p7 = pnand %p5354_p6, %p5348_p3 }
   0xf   :  { %5358 = shalt.err (!%p5355_p7)
}
  0x10   :  { %s5386_s28 = smov 128   ;;  %s5387_s29 = smov 8  }
  0x11   :  { %28 = dma.hbm_to_vmem [thread:$0]  %s5820_s2, 512, %s23_s19, [#allocation4], %s5386_s28, %s5386_s28, %s5387_s29  }
  0x12   :  { %5381 = dma.done.wait [#allocation4], 512  }
  0x13   :  { %5382 = vsyncadd [#allocation4], 4294966784  ;;  %v5388_v0 = vmov 0.0|0.0   ;;  %vm5389_vm0 = vmmov 0   ;;  %v5390_v1 = vmov 0.0   ;;  %v5391_v2 = vmov 0  }
  0x14   :  { %4926 = vmatprep.subr.bf16.mxu0 %v5388_v0  ;;  %4406 = vmatprep.mubr.msk.f32.mxu0 %vm5389_vm0, %v5390_v1  ;;  %vm64_vm1 = vcmask 261120   ;;  %v34_v3 = vld [vmem:[#allocation3] sm:$0xff]  ;;  %v35_v4 = vld [vmem:[#allocation3 + $0x8] sm:$0xff]  ;;  %v36_v5 = vld [vmem:[#allocation3 + $0x10] sm:$0xff]  ;;  %vm566_vm2 = vcmask 253952   ;;  %vm574_vm3 = vcmask 1041409  }
  0x15   :  { %5304 = vset.pattern.permute.xlu0 %v5391_v2  ;;  %4962 = vmatprep.subr.bf16.mxu1 %v5388_v0  ;;  %v74_v6 = vand.u32 4294901760, %v34_v3  ;;  %v77_v7 = vand.u32 4294901760, %v35_v4  ;;  %v37_v8 = vld [vmem:[#allocation3 + $0x18] sm:$0xff]  ;;  %v80_v9 = vand.u32 4294901760, %v36_v5  ;;  %v67_v10 = vld [vmem:[%s5819_s1] sm:$0x3] }
  0x16   :  { %4472 = vmatprep.mubr.msk.f32.mxu1 %vm5389_vm0, %v5390_v1  ;;  %v83_v11 = vand.u32 4294901760, %v37_v8  ;;  %v71_v12 = vsel %vm64_vm1, %v67_v10, 0  ;;  %v41_v13 = vld [vmem:[%s5818_s0 + $0x8] sm:$0xff]  ;;  %v40_v20 = vld [vmem:[%s5818_s0] sm:$0xff]  ;;  %vm4096_vm4 = vcmask 254976   ;;  %s5392_s18 = smov [#allocation6]  }
  0x17   :  { %v5448_v14 = vpack.c.bf16 %v77_v7, %v74_v6  ;;  %v5450_v15 = vand.u32 4294901760, %v71_v12  ;;  %v154_v16 = vsub.f32 %v34_v3, %v74_v6  ;;  %v161_v17 = vsub.f32 %v35_v4, %v77_v7  ;;  %49 = vperm.xlu0 %5304, %v41_v13   ;;  %v4155_v44 = vld [vmem:[%s5821_s3] ss:$0 sm:$0xff]  ;;  %v4156_v46 = vld [vmem:[%s5821_s3 + $0x1] ss:$0 sm:$0xff]  ;;  %s4144_s19 = sshll.u32 %s5392_s18, 4  ;;  %s4145_s19 = int_to_ptr.vmem [resolvable:$true] %s4144_s19 }
  0x18   :  { %v168_v18 = vsub.f32 %v36_v5, %v80_v9  ;;  %v175_v19 = vsub.f32 %v37_v8, %v83_v11  ;;  %v5456_v21 = vpack.c.bf16 %v83_v11, %v80_v9  ;;  %s5359_s20 = scalar_lea.vmem %s4145_s19, 32  ;;  %p5364_p9 = scmp.lt.s32.totalorder %s4145_s19, %s4145_s19 }
  0x19   :  { %4928 = vmatpush3.bf16.msra.mxu0 %v5448_v14  ;;  %v143_v22 = vsub.f32 %v71_v12, %v5450_v15  ;;  %v155_v23 = vand.u32 4294901760, %v154_v16  ;;  %v162_v24 = vand.u32 4294901760, %v161_v17  ;;  %4964 = vmatpush3.bf16.msra.mxu1 %v5448_v14  ;;  %v5475_v40 = vpack.c.bf16 %v161_v17, %v154_v16  ;;  %p5360_p8 = scmp.ne.s32.totalorder %s4145_s19, %s5359_s20  ;;  %p5365_p10 = scmp.lt.s32.totalorder %s5359_s20, %s5359_s20 }
  0x1a   :  { %4929 = vmatprep.subr.bf16.mxu0 %v5388_v0  ;;  %v169_v25 = vand.u32 4294901760, %v168_v18  ;;  %v176_v26 = vand.u32 4294901760, %v175_v19  ;;  %4965 = vmatprep.subr.bf16.mxu1 %v5388_v0  ;;  %v5480_v41 = vpack.c.bf16 %v175_v19, %v168_v18 }
  0x1b   :  { %v144_v27 = vand.u32 4294901760, %v143_v22  ;;  %v156_v28 = vsub.f32 %v154_v16, %v155_v23  ;;  %v163_v29 = vsub.f32 %v161_v17, %v162_v24  ;;  %44 = vperm.xlu0 %5304, %v40_v20   ;;  %v5492_v42 = vpack.c.bf16 %v162_v24, %v155_v23  ;;  %p5366_p11 = por %p5365_p10, %p5364_p9 }
  0x1c   :  { %v170_v30 = vsub.f32 %v168_v18, %v169_v25  ;;  %v177_v31 = vsub.f32 %v175_v19, %v176_v26  ;;  %v5496_v43 = vpack.c.bf16 %v176_v26, %v169_v25 }
  0x1d   :  { %4931 = vmatpush3.bf16.msra.mxu0 %v5456_v21  ;;  %v145_v32 = vsub.f32 %v143_v22, %v144_v27  ;;  %v157_v33 = vand.u32 4294901760, %v156_v28  ;;  %v164_v34 = vand.u32 4294901760, %v163_v29  ;;  %4967 = vmatpush3.bf16.msra.mxu1 %v5456_v21  ;;  %p5367_p12 = pnand %p5366_p11, %p5360_p8 }
  0x1e   :  { %4932 = vmatprep.subr.bf16.mxu0 %v5388_v0  ;;  %v171_v35 = vand.u32 4294901760, %v170_v30  ;;  %v178_v36 = vand.u32 4294901760, %v177_v31  ;;  %4968 = vmatprep.subr.bf16.mxu1 %v5388_v0 }
  0x1f   :  { %v146_v37 = vand.u32 4294901760, %v145_v32  ;;  %v5466_v38 = vpack.c.bf16 %v164_v34, %v157_v33 }
  0x20   :  { %v5469_v39 = vpack.c.bf16 %v178_v36, %v171_v35 }
  0x21   :  { %4407 = vmatmul.mubr.f32.vlgmr.msra.gmra.mrb[0].mxu0 %v146_v37 }
  0x22   :  { %4934 = vmatpush3.bf16.msra.mxu0 %v5466_v38  ;;  %4417 = vmatprep.mubr.msk.f32.mxu0 %vm5389_vm0, %v5390_v1 }
  0x23   :  { %4935 = vmatprep.subr.bf16.mxu0 %v5388_v0 }
  0x26   :  { %4937 = vmatpush3.bf16.msra.mxu0 %v5469_v39 }
  0x27   :  { %4938 = vmatprep.subr.bf16.mxu0 %v5388_v0 }
  0x29   :  { %4418 = vmatmul.mubr.f32.vlgmr.msra.gmra.mrb[0].mxu0 %v5450_v15 }
  0x2a   :  { %4940 = vmatpush3.bf16.msra.mxu0 %v5475_v40  ;;  %4428 = vmatprep.mubr.msk.f32.mxu0 %vm5389_vm0, %v5390_v1 }
  0x2b   :  { %4941 = vmatprep.subr.bf16.mxu0 %v5388_v0 }
  0x2e   :  { %4943 = vmatpush3.bf16.msra.mxu0 %v5480_v41 }
  0x2f   :  { %4944 = vmatprep.subr.bf16.mxu0 %v5388_v0 }
  0x31   :  { %4429 = vmatmul.mubr.f32.vlgmr.msra.gmra.mrb[0].mxu0 %v143_v22 }
  0x32   :  { %4946 = vmatpush3.bf16.msra.mxu0 %v5448_v14  ;;  %4439 = vmatprep.mubr.msk.f32.mxu0 %vm5389_vm0, %v5390_v1 }
  0x33   :  { %4947 = vmatprep.subr.bf16.mxu0 %v5388_v0 }
  0x36   :  { %4949 = vmatpush3.bf16.msra.mxu0 %v5456_v21 }
  0x37   :  { %4950 = vmatprep.subr.bf16.mxu0 %v5388_v0 }
  0x39   :  { %4440 = vmatmul.mubr.f32.vlgmr.msra.gmra.mrb[0].mxu0 %v144_v27 }
  0x3a   :  { %4952 = vmatpush3.bf16.msra.mxu0 %v5492_v42  ;;  %4450 = vmatprep.mubr.msk.f32.mxu0 %vm5389_vm0, %v5390_v1 }
  0x3b   :  { %4953 = vmatprep.subr.bf16.mxu0 %v5388_v0 }
  0x3e   :  { %4955 = vmatpush3.bf16.msra.mxu0 %v5496_v43 }
  0x3f   :  { %4956 = vmatprep.subr.bf16.mxu0 %v5388_v0 }
  0x41   :  { %4451 = vmatmul.mubr.f32.vlgmr.msra.gmra.mrb[0].mxu0 %v5450_v15 }
  0x42   :  { %4958 = vmatpush3.bf16.msra.mxu0 %v5448_v14  ;;  %4461 = vmatprep.mubr.msk.f32.mxu0 %vm5389_vm0, %v5390_v1 }
  0x43   :  { %4959 = vmatprep.subr.bf16.mxu0 %v5388_v0 }
  0x46   :  { %4961 = vmatpush3.bf16.msra.mxu0 %v5456_v21 }
  0x47   :  { %4998 = vmatprep.subr.bf16.mxu0 %v5388_v0 }
  0x49   :  { %4462 = vmatmul.mubr.f32.vlgmr.msra.gmra.mrb[0].mxu0 %v5450_v15 }
  0x4a   :  { %5000 = vmatpush3.bf16.msra.mxu0 %v5448_v14  ;;  %4538 = vmatprep.mubr.msk.f32.mxu0 %vm5389_vm0, %v5390_v1 }
  0x4b   :  { %5001 = vmatprep.subr.bf16.mxu0 %v5388_v0 }
  0x4e   :  { %5003 = vmatpush3.bf16.msra.mxu0 %v5456_v21 }
  0x4f   :  { %5004 = vmatprep.subr.bf16.mxu0 %v5388_v0 }
  0x96   :  { %v50_v45 = vpop.permute.xlu0 %49 }
  0x97   :  { %v57_v47 = vmul.f32 %v4155_v44, %v50_v45 }
  0x99   :  { %v63_v48 = vadd.f32 %v4156_v46, %v57_v47 }
  0x9a   :  { %v45_v49 = vpop.permute.xlu0 %44 }
  0x9b   :  { %66 = vst.msk [vmem:[#allocation2 + $0x8] sm:$0xff] %vm64_vm1, %v63_v48  ;;  %v56_v50 = vmul.f32 %v4155_v44, %v45_v49 }
  0x9d   :  { %v62_v51 = vadd.f32 %v4156_v46, %v56_v50 }
  0x9f   :  { %65 = vst.msk [vmem:[#allocation2] sm:$0xff] %vm64_vm1, %v62_v51 }
  0xa2   :  { %v69_v57 = vld [vmem:[#allocation2 + $0x8] sm:$0x1]  ;;  %v570_v12 = vld [vmem:[#allocation2 + $0x9] sm:$0x1]  ;;  %v1074_v31 = vld [vmem:[#allocation2 + $0xa] sm:$0x1] }
  0xa6   :  { %v68_v52 = vld [vmem:[#allocation2] sm:$0x1]  ;;  %v569_v7 = vld [vmem:[#allocation2 + $0x1] sm:$0x1]  ;;  %v1073_v26 = vld [vmem:[#allocation2 + $0x2] sm:$0x1] }
  0xa7   :  { %v1576_v49 = vld [vmem:[#allocation2 + $0x3] sm:$0x1] }
 0x11c   :  { %v554_v53 = vpop.f32.mrb[0].mxu0 }
 0x11d   :  { %v559_v54 = vrot.slane %v554_v53, 1  ;;  %v562_v55 = vadd.f32 %v554_v53, %v68_v52  ;;  %v4463_v56 = vpop.f32.mrb[1].mxu0 }
 0x11f   :  { %v563_v58 = vadd.f32 %v559_v54, %v69_v57  ;;  %5305 = vtanh.f32 %v562_v55  ;;  %v1577_v54 = vld [vmem:[#allocation2 + $0xb] sm:$0x1] }
 0x121   :  { %5307 = vtanh.f32 %v563_v58 }
 0x129   :  { %v5306_v59 = vpop.eup %5305 }
 0x12a   :  { %567 = vst.msk [vmem:[#allocation2] sm:$0x1] %vm566_vm2, %v5306_v59 }
 0x12b   :  { %v5308_v60 = vpop.eup %5307 }
 0x12c   :  { %568 = vst.msk [vmem:[#allocation2 + $0x8] sm:$0x1] %vm566_vm2, %v5308_v60  ;;  %v573_v61 = vrot.slane %v5308_v60, 7 }
 0x12e   :  { %v575_v62 = vsel %vm574_vm3, %v573_v61, %v5306_v59 }
 0x12f   :  { %v576_v63 = vsel %vm64_vm1, %v575_v62, 0 }
 0x130   :  { %v647_v2 = vand.u32 4294901760, %v576_v63 }
 0x132   :  { %v648_v3 = vsub.f32 %v576_v63, %v647_v2 }
 0x134   :  { %v649_v4 = vand.u32 4294901760, %v648_v3 }
 0x136   :  { %v650_v5 = vsub.f32 %v648_v3, %v649_v4 }
 0x138   :  { %v651_v6 = vand.u32 4294901760, %v650_v5 }
 0x13a   :  { %4473 = vmatmul.mubr.f32.vlgmr.msra.gmra.mrb[0].mxu1 %v651_v6 }
 0x13b   :  { %4970 = vmatpush3.bf16.msra.mxu1 %v5466_v38  ;;  %4483 = vmatprep.mubr.msk.f32.mxu1 %vm5389_vm0, %v5390_v1 }
 0x13c   :  { %4971 = vmatprep.subr.bf16.mxu1 %v5388_v0 }
 0x13f   :  { %4973 = vmatpush3.bf16.msra.mxu1 %v5469_v39 }
 0x140   :  { %4974 = vmatprep.subr.bf16.mxu1 %v5388_v0 }
 0x142   :  { %4484 = vmatmul.mubr.f32.vlgmr.msra.gmra.mrb[0].mxu1 %v647_v2 }
 0x143   :  { %4976 = vmatpush3.bf16.msra.mxu1 %v5475_v40  ;;  %4494 = vmatprep.mubr.msk.f32.mxu1 %vm5389_vm0, %v5390_v1 }
 0x144   :  { %4977 = vmatprep.subr.bf16.mxu1 %v5388_v0 }
 0x147   :  { %4979 = vmatpush3.bf16.msra.mxu1 %v5480_v41 }
 0x148   :  { %4980 = vmatprep.subr.bf16.mxu1 %v5388_v0 }
 0x14a   :  { %4495 = vmatmul.mubr.f32.vlgmr.msra.gmra.mrb[0].mxu1 %v648_v3 }
 0x14b   :  { %4982 = vmatpush3.bf16.msra.mxu1 %v5448_v14  ;;  %4505 = vmatprep.mubr.msk.f32.mxu1 %vm5389_vm0, %v5390_v1 }
 0x14c   :  { %4983 = vmatprep.subr.bf16.mxu1 %v5388_v0 }
 0x14f   :  { %4985 = vmatpush3.bf16.msra.mxu1 %v5456_v21 }
 0x150   :  { %4986 = vmatprep.subr.bf16.mxu1 %v5388_v0 }
 0x152   :  { %4506 = vmatmul.mubr.f32.vlgmr.msra.gmra.mrb[0].mxu1 %v649_v4  ;;  %v2079_v4 = vld [vmem:[#allocation2 + $0x4] sm:$0x1] }
 0x153   :  { %4988 = vmatpush3.bf16.msra.mxu1 %v5492_v42  ;;  %4516 = vmatprep.mubr.msk.f32.mxu1 %vm5389_vm0, %v5390_v1 }
 0x154   :  { %4989 = vmatprep.subr.bf16.mxu1 %v5388_v0 }
 0x157   :  { %4991 = vmatpush3.bf16.msra.mxu1 %v5496_v43 }
 0x158   :  { %4992 = vmatprep.subr.bf16.mxu1 %v5388_v0 }
 0x15a   :  { %4517 = vmatmul.mubr.f32.vlgmr.msra.gmra.mrb[0].mxu1 %v647_v2 }
 0x15b   :  { %4994 = vmatpush3.bf16.msra.mxu1 %v5448_v14  ;;  %4527 = vmatprep.mubr.msk.f32.mxu1 %vm5389_vm0, %v5390_v1 }
 0x15c   :  { %4995 = vmatprep.subr.bf16.mxu1 %v5388_v0 }
 0x15f   :  { %4997 = vmatpush3.bf16.msra.mxu1 %v5456_v21 }
 0x160   :  { %5034 = vmatprep.subr.bf16.mxu1 %v5388_v0 }
 0x162   :  { %4528 = vmatmul.mubr.f32.vlgmr.msra.gmra.mrb[0].mxu1 %v647_v2 }
 0x163   :  { %5036 = vmatpush3.bf16.msra.mxu1 %v5448_v14  ;;  %4604 = vmatprep.mubr.msk.f32.mxu1 %vm5389_vm0, %v5390_v1 }
 0x164   :  { %5037 = vmatprep.subr.bf16.mxu1 %v5388_v0 }
 0x167   :  { %5039 = vmatpush3.bf16.msra.mxu1 %v5456_v21 }
 0x168   :  { %5040 = vmatprep.subr.bf16.mxu1 %v5388_v0 }
 0x235   :  { %v1059_v8 = vpop.f32.mrb[0].mxu1 }
 0x236   :  { %v1064_v9 = vrot.slane %v1059_v8, 1  ;;  %v1067_v10 = vadd.f32 %v1059_v8, %v569_v7  ;;  %v4529_v11 = vpop.f32.mrb[1].mxu1 }
 0x238   :  { %v1068_v13 = vadd.f32 %v1064_v9, %v570_v12  ;;  %5309 = vtanh.f32 %v1067_v10  ;;  %v2080_v9 = vld [vmem:[#allocation2 + $0xc] sm:$0x1] }
 0x23a   :  { %5311 = vtanh.f32 %v1068_v13 }
 0x242   :  { %v5310_v15 = vpop.eup %5309 }
 0x243   :  { %1071 = vst.msk [vmem:[#allocation2 + $0x1] sm:$0x1] %vm566_vm2, %v5310_v15 }
 0x244   :  { %v5312_v16 = vpop.eup %5311 }
 0x245   :  { %1072 = vst.msk [vmem:[#allocation2 + $0x9] sm:$0x1] %vm566_vm2, %v5312_v16  ;;  %v1077_v17 = vrot.slane %v5312_v16, 7 }
 0x247   :  { %v1078_v18 = vsel %vm574_vm3, %v1077_v17, %v5310_v15 }
 0x248   :  { %v1079_v19 = vsel %vm64_vm1, %v1078_v18, 0 }
 0x249   :  { %v1150_v20 = vand.u32 4294901760, %v1079_v19 }
 0x24b   :  { %v1151_v22 = vsub.f32 %v1079_v19, %v1150_v20 }
 0x24d   :  { %v1152_v23 = vand.u32 4294901760, %v1151_v22 }
 0x24f   :  { %v1153_v24 = vsub.f32 %v1151_v22, %v1152_v23 }
 0x251   :  { %v1154_v25 = vand.u32 4294901760, %v1153_v24 }
 0x253   :  { %4539 = vmatmul.mubr.f32.vlgmr.msra.gmra.mrb[2].mxu0 %v1154_v25 }
 0x254   :  { %5006 = vmatpush3.bf16.msra.mxu0 %v5466_v38  ;;  %4549 = vmatprep.mubr.msk.f32.mxu0 %vm5389_vm0, %v5390_v1 }
 0x255   :  { %5007 = vmatprep.subr.bf16.mxu0 %v5388_v0 }
 0x258   :  { %5009 = vmatpush3.bf16.msra.mxu0 %v5469_v39 }
 0x259   :  { %5010 = vmatprep.subr.bf16.mxu0 %v5388_v0 }
 0x25b   :  { %4550 = vmatmul.mubr.f32.vlgmr.msra.gmra.mrb[2].mxu0 %v1150_v20 }
 0x25c   :  { %5012 = vmatpush3.bf16.msra.mxu0 %v5475_v40  ;;  %4560 = vmatprep.mubr.msk.f32.mxu0 %vm5389_vm0, %v5390_v1 }
 0x25d   :  { %5013 = vmatprep.subr.bf16.mxu0 %v5388_v0 }
 0x260   :  { %5015 = vmatpush3.bf16.msra.mxu0 %v5480_v41 }
 0x261   :  { %5016 = vmatprep.subr.bf16.mxu0 %v5388_v0 }
 0x263   :  { %4561 = vmatmul.mubr.f32.vlgmr.msra.gmra.mrb[2].mxu0 %v1151_v22 }
 0x264   :  { %5018 = vmatpush3.bf16.msra.mxu0 %v5448_v14  ;;  %4571 = vmatprep.mubr.msk.f32.mxu0 %vm5389_vm0, %v5390_v1 }
 0x265   :  { %5019 = vmatprep.subr.bf16.mxu0 %v5388_v0 }
 0x268   :  { %5021 = vmatpush3.bf16.msra.mxu0 %v5456_v21 }
 0x269   :  { %5022 = vmatprep.subr.bf16.mxu0 %v5388_v0 }
 0x26b   :  { %4572 = vmatmul.mubr.f32.vlgmr.msra.gmra.mrb[2].mxu0 %v1152_v23  ;;  %v2582_v23 = vld [vmem:[#allocation2 + $0x5] sm:$0x1] }
 0x26c   :  { %5024 = vmatpush3.bf16.msra.mxu0 %v5492_v42  ;;  %4582 = vmatprep.mubr.msk.f32.mxu0 %vm5389_vm0, %v5390_v1 }
 0x26d   :  { %5025 = vmatprep.subr.bf16.mxu0 %v5388_v0 }
 0x270   :  { %5027 = vmatpush3.bf16.msra.mxu0 %v5496_v43 }
 0x271   :  { %5028 = vmatprep.subr.bf16.mxu0 %v5388_v0 }
 0x273   :  { %4583 = vmatmul.mubr.f32.vlgmr.msra.gmra.mrb[2].mxu0 %v1150_v20 }
 0x274   :  { %5030 = vmatpush3.bf16.msra.mxu0 %v5448_v14  ;;  %4593 = vmatprep.mubr.msk.f32.mxu0 %vm5389_vm0, %v5390_v1 }
 0x275   :  { %5031 = vmatprep.subr.bf16.mxu0 %v5388_v0 }
 0x278   :  { %5033 = vmatpush3.bf16.msra.mxu0 %v5456_v21 }
 0x279   :  { %5070 = vmatprep.subr.bf16.mxu0 %v5388_v0 }
 0x27b   :  { %4594 = vmatmul.mubr.f32.vlgmr.msra.gmra.mrb[2].mxu0 %v1150_v20 }
 0x27c   :  { %5072 = vmatpush3.bf16.msra.mxu0 %v5448_v14  ;;  %4670 = vmatprep.mubr.msk.f32.mxu0 %vm5389_vm0, %v5390_v1 }
 0x27d   :  { %5073 = vmatprep.subr.bf16.mxu0 %v5388_v0 }
 0x280   :  { %5075 = vmatpush3.bf16.msra.mxu0 %v5456_v21 }
 0x281   :  { %5076 = vmatprep.subr.bf16.mxu0 %v5388_v0 }
 0x34e   :  { %v1562_v27 = vpop.f32.mrb[2].mxu0 }
 0x34f   :  { %v1567_v28 = vrot.slane %v1562_v27, 1  ;;  %v1570_v29 = vadd.f32 %v1562_v27, %v1073_v26  ;;  %v4595_v30 = vpop.f32.mrb[3].mxu0 }
 0x351   :  { %v1571_v32 = vadd.f32 %v1567_v28, %v1074_v31  ;;  %5313 = vtanh.f32 %v1570_v29  ;;  %v2583_v28 = vld [vmem:[#allocation2 + $0xd] sm:$0x1] }
 0x353   :  { %5315 = vtanh.f32 %v1571_v32 }
 0x35b   :  { %v5314_v33 = vpop.eup %5313 }
 0x35c   :  { %1574 = vst.msk [vmem:[#allocation2 + $0x2] sm:$0x1] %vm566_vm2, %v5314_v33 }
 0x35d   :  { %v5316_v34 = vpop.eup %5315 }
 0x35e   :  { %1575 = vst.msk [vmem:[#allocation2 + $0xa] sm:$0x1] %vm566_vm2, %v5316_v34  ;;  %v1580_v35 = vrot.slane %v5316_v34, 7 }
 0x360   :  { %v1581_v36 = vsel %vm574_vm3, %v1580_v35, %v5314_v33 }
 0x361   :  { %v1582_v37 = vsel %vm64_vm1, %v1581_v36, 0 }
 0x362   :  { %v1653_v44 = vand.u32 4294901760, %v1582_v37 }
 0x364   :  { %v1654_v45 = vsub.f32 %v1582_v37, %v1653_v44 }
 0x366   :  { %v1655_v46 = vand.u32 4294901760, %v1654_v45 }
 0x368   :  { %v1656_v47 = vsub.f32 %v1654_v45, %v1655_v46 }
 0x36a   :  { %v1657_v48 = vand.u32 4294901760, %v1656_v47 }
 0x36c   :  { %4605 = vmatmul.mubr.f32.vlgmr.msra.gmra.mrb[2].mxu1 %v1657_v48 }
 0x36d   :  { %5042 = vmatpush3.bf16.msra.mxu1 %v5466_v38  ;;  %4615 = vmatprep.mubr.msk.f32.mxu1 %vm5389_vm0, %v5390_v1 }
 0x36e   :  { %5043 = vmatprep.subr.bf16.mxu1 %v5388_v0 }
 0x371   :  { %5045 = vmatpush3.bf16.msra.mxu1 %v5469_v39 }
 0x372   :  { %5046 = vmatprep.subr.bf16.mxu1 %v5388_v0 }
 0x374   :  { %4616 = vmatmul.mubr.f32.vlgmr.msra.gmra.mrb[2].mxu1 %v1653_v44 }
 0x375   :  { %5048 = vmatpush3.bf16.msra.mxu1 %v5475_v40  ;;  %4626 = vmatprep.mubr.msk.f32.mxu1 %vm5389_vm0, %v5390_v1 }
 0x376   :  { %5049 = vmatprep.subr.bf16.mxu1 %v5388_v0 }
 0x379   :  { %5051 = vmatpush3.bf16.msra.mxu1 %v5480_v41 }
 0x37a   :  { %5052 = vmatprep.subr.bf16.mxu1 %v5388_v0 }
 0x37c   :  { %4627 = vmatmul.mubr.f32.vlgmr.msra.gmra.mrb[2].mxu1 %v1654_v45 }
 0x37d   :  { %5054 = vmatpush3.bf16.msra.mxu1 %v5448_v14  ;;  %4637 = vmatprep.mubr.msk.f32.mxu1 %vm5389_vm0, %v5390_v1 }
 0x37e   :  { %5055 = vmatprep.subr.bf16.mxu1 %v5388_v0 }
 0x381   :  { %5057 = vmatpush3.bf16.msra.mxu1 %v5456_v21 }
 0x382   :  { %5058 = vmatprep.subr.bf16.mxu1 %v5388_v0 }
 0x384   :  { %4638 = vmatmul.mubr.f32.vlgmr.msra.gmra.mrb[2].mxu1 %v1655_v46  ;;  %v3085_v46 = vld [vmem:[#allocation2 + $0x6] sm:$0x1] }
 0x385   :  { %5060 = vmatpush3.bf16.msra.mxu1 %v5492_v42  ;;  %4648 = vmatprep.mubr.msk.f32.mxu1 %vm5389_vm0, %v5390_v1 }
 0x386   :  { %5061 = vmatprep.subr.bf16.mxu1 %v5388_v0 }
 0x389   :  { %5063 = vmatpush3.bf16.msra.mxu1 %v5496_v43 }
 0x38a   :  { %5064 = vmatprep.subr.bf16.mxu1 %v5388_v0 }
 0x38c   :  { %4649 = vmatmul.mubr.f32.vlgmr.msra.gmra.mrb[2].mxu1 %v1653_v44 }
 0x38d   :  { %5066 = vmatpush3.bf16.msra.mxu1 %v5448_v14  ;;  %4659 = vmatprep.mubr.msk.f32.mxu1 %vm5389_vm0, %v5390_v1 }
 0x38e   :  { %5067 = vmatprep.subr.bf16.mxu1 %v5388_v0 }
 0x391   :  { %5069 = vmatpush3.bf16.msra.mxu1 %v5456_v21 }
 0x392   :  { %5106 = vmatprep.subr.bf16.mxu1 %v5388_v0 }
 0x394   :  { %4660 = vmatmul.mubr.f32.vlgmr.msra.gmra.mrb[2].mxu1 %v1653_v44 }
 0x395   :  { %5108 = vmatpush3.bf16.msra.mxu1 %v5448_v14  ;;  %4736 = vmatprep.mubr.msk.f32.mxu1 %vm5389_vm0, %v5390_v1 }
 0x396   :  { %5109 = vmatprep.subr.bf16.mxu1 %v5388_v0 }
 0x399   :  { %5111 = vmatpush3.bf16.msra.mxu1 %v5456_v21 }
 0x39a   :  { %5112 = vmatprep.subr.bf16.mxu1 %v5388_v0 }
 0x467   :  { %v2065_v50 = vpop.f32.mrb[2].mxu1 }
 0x468   :  { %v2070_v51 = vrot.slane %v2065_v50, 1  ;;  %v2073_v52 = vadd.f32 %v2065_v50, %v1576_v49  ;;  %v4661_v53 = vpop.f32.mrb[3].mxu1 }
 0x46a   :  { %v2074_v55 = vadd.f32 %v2070_v51, %v1577_v54  ;;  %5317 = vtanh.f32 %v2073_v52  ;;  %v3086_v51 = vld [vmem:[#allocation2 + $0xe] sm:$0x1] }
 0x46c   :  { %5319 = vtanh.f32 %v2074_v55 }
 0x474   :  { %v5318_v56 = vpop.eup %5317 }
 0x475   :  { %2077 = vst.msk [vmem:[#allocation2 + $0x3] sm:$0x1] %vm566_vm2, %v5318_v56 }
 0x476   :  { %v5320_v57 = vpop.eup %5319 }
 0x477   :  { %2078 = vst.msk [vmem:[#allocation2 + $0xb] sm:$0x1] %vm566_vm2, %v5320_v57  ;;  %v2083_v58 = vrot.slane %v5320_v57, 7 }
 0x479   :  { %v2084_v59 = vsel %vm574_vm3, %v2083_v58, %v5318_v56 }
 0x47a   :  { %v2085_v60 = vsel %vm64_vm1, %v2084_v59, 0 }
 0x47b   :  { %v2156_v61 = vand.u32 4294901760, %v2085_v60 }
 0x47d   :  { %v2157_v62 = vsub.f32 %v2085_v60, %v2156_v61 }
 0x47f   :  { %v2158_v63 = vand.u32 4294901760, %v2157_v62 }
 0x481   :  { %v2159_v2 = vsub.f32 %v2157_v62, %v2158_v63 }
 0x483   :  { %v2160_v3 = vand.u32 4294901760, %v2159_v2 }
 0x485   :  { %4671 = vmatmul.mubr.f32.vlgmr.msra.gmra.mrb[4].mxu0 %v2160_v3  ;;  %v4157_v3 = vld [vmem:[%s5821_s3 + $0x2] ss:$0 sm:$0xff] }
 0x486   :  { %5078 = vmatpush3.bf16.msra.mxu0 %v5466_v38  ;;  %4681 = vmatprep.mubr.msk.f32.mxu0 %vm5389_vm0, %v5390_v1 }
 0x487   :  { %5079 = vmatprep.subr.bf16.mxu0 %v5388_v0 }
 0x48a   :  { %5081 = vmatpush3.bf16.msra.mxu0 %v5469_v39 }
 0x48b   :  { %5082 = vmatprep.subr.bf16.mxu0 %v5388_v0 }
 0x48d   :  { %4682 = vmatmul.mubr.f32.vlgmr.msra.gmra.mrb[4].mxu0 %v2156_v61 }
 0x48e   :  { %5084 = vmatpush3.bf16.msra.mxu0 %v5475_v40  ;;  %4692 = vmatprep.mubr.msk.f32.mxu0 %vm5389_vm0, %v5390_v1 }
 0x48f   :  { %5085 = vmatprep.subr.bf16.mxu0 %v5388_v0 }
 0x492   :  { %5087 = vmatpush3.bf16.msra.mxu0 %v5480_v41 }
 0x493   :  { %5088 = vmatprep.subr.bf16.mxu0 %v5388_v0 }
 0x495   :  { %4693 = vmatmul.mubr.f32.vlgmr.msra.gmra.mrb[4].mxu0 %v2157_v62 }
 0x496   :  { %5090 = vmatpush3.bf16.msra.mxu0 %v5448_v14  ;;  %4703 = vmatprep.mubr.msk.f32.mxu0 %vm5389_vm0, %v5390_v1 }
 0x497   :  { %5091 = vmatprep.subr.bf16.mxu0 %v5388_v0 }
 0x49a   :  { %5093 = vmatpush3.bf16.msra.mxu0 %v5456_v21 }
 0x49b   :  { %5094 = vmatprep.subr.bf16.mxu0 %v5388_v0 }
 0x49d   :  { %4704 = vmatmul.mubr.f32.vlgmr.msra.gmra.mrb[4].mxu0 %v2158_v63  ;;  %v3589_v63 = vld [vmem:[#allocation2 + $0xf] sm:$0x1] }
 0x49e   :  { %5096 = vmatpush3.bf16.msra.mxu0 %v5492_v42  ;;  %4714 = vmatprep.mubr.msk.f32.mxu0 %vm5389_vm0, %v5390_v1 }
 0x49f   :  { %5097 = vmatprep.subr.bf16.mxu0 %v5388_v0 }
 0x4a2   :  { %5099 = vmatpush3.bf16.msra.mxu0 %v5496_v43 }
 0x4a3   :  { %5100 = vmatprep.subr.bf16.mxu0 %v5388_v0 }
 0x4a5   :  { %4715 = vmatmul.mubr.f32.vlgmr.msra.gmra.mrb[4].mxu0 %v2156_v61 }
 0x4a6   :  { %5102 = vmatpush3.bf16.msra.mxu0 %v5448_v14  ;;  %4725 = vmatprep.mubr.msk.f32.mxu0 %vm5389_vm0, %v5390_v1 }
 0x4a7   :  { %5103 = vmatprep.subr.bf16.mxu0 %v5388_v0 }
 0x4aa   :  { %5105 = vmatpush3.bf16.msra.mxu0 %v5456_v21 }
 0x4ab   :  { %5142 = vmatprep.subr.bf16.mxu0 %v5388_v0 }
 0x4ad   :  { %4726 = vmatmul.mubr.f32.vlgmr.msra.gmra.mrb[4].mxu0 %v2156_v61 }
 0x4ae   :  { %5144 = vmatpush3.bf16.msra.mxu0 %v5448_v14  ;;  %4802 = vmatprep.mubr.msk.f32.mxu0 %vm5389_vm0, %v5390_v1 }
 0x4af   :  { %5145 = vmatprep.subr.bf16.mxu0 %v5388_v0 }
 0x4b2   :  { %5147 = vmatpush3.bf16.msra.mxu0 %v5456_v21 }
 0x4b3   :  { %5148 = vmatprep.subr.bf16.mxu0 %v5388_v0 }
 0x580   :  { %v2568_v5 = vpop.f32.mrb[4].mxu0 }
 0x581   :  { %v2573_v6 = vrot.slane %v2568_v5, 1  ;;  %v2576_v7 = vadd.f32 %v2568_v5, %v2079_v4  ;;  %v4727_v8 = vpop.f32.mrb[5].mxu0 }
 0x583   :  { %v2577_v10 = vadd.f32 %v2573_v6, %v2080_v9  ;;  %5321 = vtanh.f32 %v2576_v7 }
 0x585   :  { %5323 = vtanh.f32 %v2577_v10 }
 0x58d   :  { %v5322_v11 = vpop.eup %5321 }
 0x58e   :  { %2580 = vst.msk [vmem:[#allocation2 + $0x4] sm:$0x1] %vm566_vm2, %v5322_v11 }
 0x58f   :  { %v5324_v12 = vpop.eup %5323 }
 0x590   :  { %2581 = vst.msk [vmem:[#allocation2 + $0xc] sm:$0x1] %vm566_vm2, %v5324_v12  ;;  %v2586_v13 = vrot.slane %v5324_v12, 7 }
 0x592   :  { %v2587_v15 = vsel %vm574_vm3, %v2586_v13, %v5322_v11 }
 0x593   :  { %v2588_v16 = vsel %vm64_vm1, %v2587_v15, 0 }
 0x594   :  { %v2659_v17 = vand.u32 4294901760, %v2588_v16 }
 0x596   :  { %v2660_v18 = vsub.f32 %v2588_v16, %v2659_v17 }
 0x598   :  { %v2661_v19 = vand.u32 4294901760, %v2660_v18 }
 0x59a   :  { %v2662_v20 = vsub.f32 %v2660_v18, %v2661_v19 }
 0x59c   :  { %v2663_v22 = vand.u32 4294901760, %v2662_v20 }
 0x59e   :  { %4737 = vmatmul.mubr.f32.vlgmr.msra.gmra.mrb[4].mxu1 %v2663_v22 }
 0x59f   :  { %5114 = vmatpush3.bf16.msra.mxu1 %v5466_v38  ;;  %4747 = vmatprep.mubr.msk.f32.mxu1 %vm5389_vm0, %v5390_v1 }
 0x5a0   :  { %5115 = vmatprep.subr.bf16.mxu1 %v5388_v0 }
 0x5a3   :  { %5117 = vmatpush3.bf16.msra.mxu1 %v5469_v39 }
 0x5a4   :  { %5118 = vmatprep.subr.bf16.mxu1 %v5388_v0 }
 0x5a6   :  { %4748 = vmatmul.mubr.f32.vlgmr.msra.gmra.mrb[4].mxu1 %v2659_v17 }
 0x5a7   :  { %5120 = vmatpush3.bf16.msra.mxu1 %v5475_v40  ;;  %4758 = vmatprep.mubr.msk.f32.mxu1 %vm5389_vm0, %v5390_v1 }
 0x5a8   :  { %5121 = vmatprep.subr.bf16.mxu1 %v5388_v0 }
 0x5ab   :  { %5123 = vmatpush3.bf16.msra.mxu1 %v5480_v41 }
 0x5ac   :  { %5124 = vmatprep.subr.bf16.mxu1 %v5388_v0 }
 0x5ae   :  { %4759 = vmatmul.mubr.f32.vlgmr.msra.gmra.mrb[4].mxu1 %v2660_v18 }
 0x5af   :  { %5126 = vmatpush3.bf16.msra.mxu1 %v5448_v14  ;;  %4769 = vmatprep.mubr.msk.f32.mxu1 %vm5389_vm0, %v5390_v1 }
 0x5b0   :  { %5127 = vmatprep.subr.bf16.mxu1 %v5388_v0 }
 0x5b3   :  { %5129 = vmatpush3.bf16.msra.mxu1 %v5456_v21 }
 0x5b4   :  { %5130 = vmatprep.subr.bf16.mxu1 %v5388_v0 }
 0x5b6   :  { %4770 = vmatmul.mubr.f32.vlgmr.msra.gmra.mrb[4].mxu1 %v2661_v19 }
 0x5b7   :  { %5132 = vmatpush3.bf16.msra.mxu1 %v5492_v42  ;;  %4780 = vmatprep.mubr.msk.f32.mxu1 %vm5389_vm0, %v5390_v1 }
 0x5b8   :  { %5133 = vmatprep.subr.bf16.mxu1 %v5388_v0 }
 0x5bb   :  { %5135 = vmatpush3.bf16.msra.mxu1 %v5496_v43 }
 0x5bc   :  { %5136 = vmatprep.subr.bf16.mxu1 %v5388_v0 }
 0x5be   :  { %4781 = vmatmul.mubr.f32.vlgmr.msra.gmra.mrb[4].mxu1 %v2659_v17 }
 0x5bf   :  { %5138 = vmatpush3.bf16.msra.mxu1 %v5448_v14  ;;  %4791 = vmatprep.mubr.msk.f32.mxu1 %vm5389_vm0, %v5390_v1 }
 0x5c0   :  { %5139 = vmatprep.subr.bf16.mxu1 %v5388_v0 }
 0x5c3   :  { %5141 = vmatpush3.bf16.msra.mxu1 %v5456_v21 }
 0x5c4   :  { %5178 = vmatprep.subr.bf16.mxu1 %v5388_v0 }
 0x5c6   :  { %4792 = vmatmul.mubr.f32.vlgmr.msra.gmra.mrb[4].mxu1 %v2659_v17 }
 0x5c7   :  { %5180 = vmatpush3.bf16.msra.mxu1 %v5448_v14  ;;  %4868 = vmatprep.mubr.msk.f32.mxu1 %vm5389_vm0, %v5390_v1 }
 0x5c8   :  { %5181 = vmatprep.subr.bf16.mxu1 %v5388_v0 }
 0x5cb   :  { %5183 = vmatpush3.bf16.msra.mxu1 %v5456_v21 }
 0x5cc   :  { %5184 = vmatprep.subr.bf16.mxu1 %v5388_v0 }
 0x699   :  { %v3071_v24 = vpop.f32.mrb[4].mxu1 }
 0x69a   :  { %v3076_v25 = vrot.slane %v3071_v24, 1  ;;  %v3079_v26 = vadd.f32 %v3071_v24, %v2582_v23  ;;  %v4793_v27 = vpop.f32.mrb[5].mxu1 }
 0x69c   :  { %v3080_v29 = vadd.f32 %v3076_v25, %v2583_v28  ;;  %5325 = vtanh.f32 %v3079_v26 }
 0x69e   :  { %5327 = vtanh.f32 %v3080_v29 }
 0x6a6   :  { %v5326_v30 = vpop.eup %5325 }
 0x6a7   :  { %3083 = vst.msk [vmem:[#allocation2 + $0x5] sm:$0x1] %vm566_vm2, %v5326_v30 }
 0x6a8   :  { %v5328_v31 = vpop.eup %5327 }
 0x6a9   :  { %3084 = vst.msk [vmem:[#allocation2 + $0xd] sm:$0x1] %vm566_vm2, %v5328_v31  ;;  %v3089_v32 = vrot.slane %v5328_v31, 7 }
 0x6ab   :  { %v3090_v33 = vsel %vm574_vm3, %v3089_v32, %v5326_v30 }
 0x6ac   :  { %v3091_v34 = vsel %vm64_vm1, %v3090_v33, 0 }
 0x6ad   :  { %v3162_v35 = vand.u32 4294901760, %v3091_v34 }
 0x6af   :  { %v3163_v36 = vsub.f32 %v3091_v34, %v3162_v35 }
 0x6b1   :  { %v3164_v37 = vand.u32 4294901760, %v3163_v36 }
 0x6b3   :  { %v3165_v44 = vsub.f32 %v3163_v36, %v3164_v37 }
 0x6b5   :  { %v3166_v45 = vand.u32 4294901760, %v3165_v44 }
 0x6b7   :  { %4803 = vmatmul.mubr.f32.vlgmr.msra.gmra.mrb[6].mxu0 %v3166_v45 }
 0x6b8   :  { %5150 = vmatpush3.bf16.msra.mxu0 %v5466_v38  ;;  %4813 = vmatprep.mubr.msk.f32.mxu0 %vm5389_vm0, %v5390_v1 }
 0x6b9   :  { %5151 = vmatprep.subr.bf16.mxu0 %v5388_v0 }
 0x6bc   :  { %5153 = vmatpush3.bf16.msra.mxu0 %v5469_v39 }
 0x6bd   :  { %5154 = vmatprep.subr.bf16.mxu0 %v5388_v0 }
 0x6bf   :  { %4814 = vmatmul.mubr.f32.vlgmr.msra.gmra.mrb[6].mxu0 %v3162_v35 }
 0x6c0   :  { %5156 = vmatpush3.bf16.msra.mxu0 %v5475_v40  ;;  %4824 = vmatprep.mubr.msk.f32.mxu0 %vm5389_vm0, %v5390_v1 }
 0x6c1   :  { %5157 = vmatprep.subr.bf16.mxu0 %v5388_v0 }
 0x6c4   :  { %5159 = vmatpush3.bf16.msra.mxu0 %v5480_v41 }
 0x6c5   :  { %5160 = vmatprep.subr.bf16.mxu0 %v5388_v0 }
 0x6c7   :  { %4825 = vmatmul.mubr.f32.vlgmr.msra.gmra.mrb[6].mxu0 %v3163_v36 }
 0x6c8   :  { %5162 = vmatpush3.bf16.msra.mxu0 %v5448_v14  ;;  %4835 = vmatprep.mubr.msk.f32.mxu0 %vm5389_vm0, %v5390_v1 }
 0x6c9   :  { %5163 = vmatprep.subr.bf16.mxu0 %v5388_v0 }
 0x6cc   :  { %5165 = vmatpush3.bf16.msra.mxu0 %v5456_v21 }
 0x6cd   :  { %5166 = vmatprep.subr.bf16.mxu0 %v5388_v0 }
 0x6cf   :  { %4836 = vmatmul.mubr.f32.vlgmr.msra.gmra.mrb[6].mxu0 %v3164_v37 }
 0x6d0   :  { %5168 = vmatpush3.bf16.msra.mxu0 %v5492_v42  ;;  %4846 = vmatprep.mubr.msk.f32.mxu0 %vm5389_vm0, %v5390_v1 }
 0x6d1   :  { %5169 = vmatprep.subr.bf16.mxu0 %v5388_v0 }
 0x6d4   :  { %5171 = vmatpush3.bf16.msra.mxu0 %v5496_v43 }
 0x6d5   :  { %5172 = vmatprep.subr.bf16.mxu0 %v5388_v0 }
 0x6d7   :  { %4847 = vmatmul.mubr.f32.vlgmr.msra.gmra.mrb[6].mxu0 %v3162_v35 }
 0x6d8   :  { %5174 = vmatpush3.bf16.msra.mxu0 %v5448_v14  ;;  %4857 = vmatprep.mubr.msk.f32.mxu0 %vm5389_vm0, %v5390_v1 }
 0x6d9   :  { %5175 = vmatprep.subr.bf16.mxu0 %v5388_v0 }
 0x6dc   :  { %5177 = vmatpush3.bf16.msra.mxu0 %v5456_v21 }
 0x6df   :  { %4858 = vmatmul.mubr.f32.vlgmr.msra.gmra.mrb[6].mxu0 %v3162_v35 }
 0x7b2   :  { %v3574_v47 = vpop.f32.mrb[6].mxu0 }
 0x7b3   :  { %v3579_v48 = vrot.slane %v3574_v47, 1  ;;  %v3582_v49 = vadd.f32 %v3574_v47, %v3085_v46  ;;  %v4859_v50 = vpop.f32.mrb[7].mxu0 }
 0x7b5   :  { %v3583_v52 = vadd.f32 %v3579_v48, %v3086_v51  ;;  %5329 = vtanh.f32 %v3582_v49 }
 0x7b7   :  { %5331 = vtanh.f32 %v3583_v52 }
 0x7bf   :  { %v5330_v53 = vpop.eup %5329 }
 0x7c0   :  { %3586 = vst.msk [vmem:[#allocation2 + $0x6] sm:$0x1] %vm566_vm2, %v5330_v53 }
 0x7c1   :  { %v5332_v54 = vpop.eup %5331 }
 0x7c2   :  { %3587 = vst.msk [vmem:[#allocation2 + $0xe] sm:$0x1] %vm566_vm2, %v5332_v54  ;;  %v3592_v55 = vrot.slane %v5332_v54, 7 }
 0x7c4   :  { %v3593_v56 = vsel %vm574_vm3, %v3592_v55, %v5330_v53 }
 0x7c5   :  { %v3594_v57 = vsel %vm64_vm1, %v3593_v56, 0 }
 0x7c6   :  { %v3665_v58 = vand.u32 4294901760, %v3594_v57 }
 0x7c8   :  { %v3666_v59 = vsub.f32 %v3594_v57, %v3665_v58 }
 0x7ca   :  { %v3667_v60 = vand.u32 4294901760, %v3666_v59 }
 0x7cc   :  { %v3668_v61 = vsub.f32 %v3666_v59, %v3667_v60 }
 0x7ce   :  { %v3669_v62 = vand.u32 4294901760, %v3668_v61 }
 0x7d0   :  { %4869 = vmatmul.mubr.f32.vlgmr.msra.gmra.mrb[6].mxu1 %v3669_v62 }
 0x7d1   :  { %5186 = vmatpush3.bf16.msra.mxu1 %v5466_v38  ;;  %4879 = vmatprep.mubr.msk.f32.mxu1 %vm5389_vm0, %v5390_v1  ;;  %v4099_v38 = vld [vmem:[%s5821_s3 + $0x3] sm:$0x1] }
 0x7d2   :  { %5187 = vmatprep.subr.bf16.mxu1 %v5388_v0  ;;  %5294 = vpush %v4099_v38 }
 0x7d5   :  { %5189 = vmatpush3.bf16.msra.mxu1 %v5469_v39  ;;  %v3588_v39 = vld [vmem:[#allocation2 + $0x7] sm:$0x1] }
 0x7d6   :  { %5190 = vmatprep.subr.bf16.mxu1 %v5388_v0 }
 0x7d8   :  { %4880 = vmatmul.mubr.f32.vlgmr.msra.gmra.mrb[6].mxu1 %v3665_v58 }
 0x7d9   :  { %5192 = vmatpush3.bf16.msra.mxu1 %v5475_v40  ;;  %4890 = vmatprep.mubr.msk.f32.mxu1 %vm5389_vm0, %v5390_v1 }
 0x7da   :  { %5193 = vmatprep.subr.bf16.mxu1 %v5388_v0 }
 0x7dd   :  { %5195 = vmatpush3.bf16.msra.mxu1 %v5480_v41 }
 0x7de   :  { %5196 = vmatprep.subr.bf16.mxu1 %v5388_v0 }
 0x7e0   :  { %4891 = vmatmul.mubr.f32.vlgmr.msra.gmra.mrb[6].mxu1 %v3666_v59 }
 0x7e1   :  { %5198 = vmatpush3.bf16.msra.mxu1 %v5448_v14  ;;  %4901 = vmatprep.mubr.msk.f32.mxu1 %vm5389_vm0, %v5390_v1 }
 0x7e2   :  { %5199 = vmatprep.subr.bf16.mxu1 %v5388_v0 }
 0x7e5   :  { %5201 = vmatpush3.bf16.msra.mxu1 %v5456_v21 }
 0x7e6   :  { %5202 = vmatprep.subr.bf16.mxu1 %v5388_v0 }
 0x7e8   :  { %4902 = vmatmul.mubr.f32.vlgmr.msra.gmra.mrb[6].mxu1 %v3667_v60 }
 0x7e9   :  { %5204 = vmatpush3.bf16.msra.mxu1 %v5492_v42  ;;  %4912 = vmatprep.mubr.msk.f32.mxu1 %vm5389_vm0, %v5390_v1 }
 0x7ea   :  { %5205 = vmatprep.subr.bf16.mxu1 %v5388_v0 }
 0x7ed   :  { %5207 = vmatpush3.bf16.msra.mxu1 %v5496_v43 }
 0x7ee   :  { %5208 = vmatprep.subr.bf16.mxu1 %v5388_v0 }
 0x7f0   :  { %4913 = vmatmul.mubr.f32.vlgmr.msra.gmra.mrb[6].mxu1 %v3665_v58 }
 0x7f1   :  { %5210 = vmatpush3.bf16.msra.mxu1 %v5448_v14  ;;  %4923 = vmatprep.mubr.msk.f32.mxu1 %vm5389_vm0, %v5390_v1 }
 0x7f2   :  { %5211 = vmatprep.subr.bf16.mxu1 %v5388_v0 }
 0x7f5   :  { %5213 = vmatpush3.bf16.msra.mxu1 %v5456_v21 }
 0x7f8   :  { %4924 = vmatmul.mubr.f32.vlgmr.msra.gmra.mrb[6].mxu1 %v3665_v58 }
 0x8cb   :  { %v4077_v40 = vpop.f32.mrb[6].mxu1 }
 0x8cc   :  { %v4082_v41 = vrot.slane %v4077_v40, 1  ;;  %v4085_v42 = vadd.f32 %v4077_v40, %v3588_v39  ;;  %v4925_v43 = vpop.f32.mrb[7].mxu1 }
 0x8ce   :  { %v4086_v14 = vadd.f32 %v4082_v41, %v3589_v63  ;;  %5333 = vtanh.f32 %v4085_v42 }
 0x8d0   :  { %5335 = vtanh.f32 %v4086_v14 }
 0x8d8   :  { %v5334_v1 = vpop.eup %5333 }
 0x8d9   :  { %4089 = vst.msk [vmem:[#allocation2 + $0x7] sm:$0x1] %vm566_vm2, %v5334_v1 }
 0x8da   :  { %v5336_v0 = vpop.eup %5335 }
 0x8db   :  { %4090 = vst.msk [vmem:[#allocation2 + $0xf] sm:$0x1] %vm566_vm2, %v5336_v0  ;;  %v4093_v21 = vrot.slane %v5336_v0, 7 }
 0x8dd   :  { %v4094_v2 = vsel %vm574_vm3, %v4093_v21, %v5334_v1 }
 0x8de   :  { %4097 = vst.msk [vmem:[#allocation6] sm:$0x3] %vm4096_vm4, %v4094_v2 }
 0x8e0   :  { %v4100_v4 = vld [vmem:[#allocation2] sm:$0xff] }
 0x8e1   :  { %v4106_v5 = vmul.f32 %v4157_v3, %v4100_v4 }
 0x8e2   :  { %v4101_v6 = vld [vmem:[#allocation2 + $0x8] sm:$0xff] }
 0x8e3   :  { %v4108_v7 = vsel %vm64_vm1, %v4106_v5, 0.0  ;;  %v4107_v8 = vmul.f32 %v4157_v3, %v4101_v6 }
 0x8e4   :  { %4109 = vadd.xlane.f32.xlu1 %v4108_v7 }
 0x8e5   :  { %v4111_v9 = vsel %vm64_vm1, %v4107_v8, 0.0 }
 0x8e8   :  { %4112 = vadd.xlane.f32.xlu1 %v4111_v9 }
 0x8e9   :  { %5370 = shalt.err (!%p5367_p12)
}
 0x8ea   :  { %s5371_s22 = scalar_lea.hbm %s5823_s5, 32 }
 0x8eb   :  { %p5372_p13 = scmp.ne.s32.totalorder %s5823_s5, %s5371_s22  ;;  %p5375_p0 = scmp.lt.u32.totalorder %s5371_s22, %s5823_s5 }
 0x8ed   :  { %p5377_p1 = pnand %p5375_p0, %p5372_p13 }
 0x8ef   :  { %5380 = shalt.err (!%p5377_p1)
}
 0x8f0   :  { %4147 = dma.vmem_to_hbm [thread:$0]  %s4145_s19, 32, %s5823_s5, [#allocation5]   ;;  %v4122_v10 = vlaneseq  ;;  %vm4134_vm5 = vcmask 58368  }
 0x8f1   :  { %s5295_s29 = spop %5294 }
 0x8f2   :  { %v4123_v11 = vand.u32 127, %v4122_v10  ;;  %v4125_v12 = vshrl.u32 %v4122_v10, 7  ;;  %v4116_v13 = vstv %s5295_s29 }
 0x8f4   :  { %v4126_v16 = vsub.s32 %v4123_v11, %v4125_v12 }
 0x971   :  { %v4110_v15 = vpop.xlane.xlu1 %4109 }
 0x972   :  { %v4118_v17 = vadd.f32 %v4116_v13, %v4110_v15 }
 0x974   :  { %v4127_v20 = vrot.slane %v4118_v17, %v4126_v16 }
 0x975   :  { %v4113_v18 = vpop.xlane.xlu1 %4112 }
 0x976   :  { %v4119_v19 = vadd.f32 %v4116_v13, %v4113_v18 }
 0x978   :  { %v4131_v22 = vrot.slane %v4119_v19, %v4126_v16 }
 0x97a   :  { %v4132_v23 = vsel %vm574_vm3, %v4131_v22, %v4127_v20 }
 0x97b   :  { %4135 = vst.msk [vmem:[%s5822_s4] sm:$0x3] %vm4134_vm5, %v4132_v23 }
 0x97c   :  { %5383 = dma.done.wait [#allocation5], 32  }
 0x97d   :  { %5384 = vsyncadd [#allocation5], 4294967264 }
 0x97e   :  { %4153 = vsyncpa [#allocation4], 1 }
 0x97f   :  { %4154 = vsyncpa [#allocation5], 1 }

</bundles_post_ra>
